<compile_context>
chip_gen: v6e
topology: v6e:2x2x1
jax: 0.10.0
libtpu: 0.0.40
codegen_flags: <defaults>
</compile_context>

<pallas_src>
import functools
import math

import jax
import jax.numpy as jnp
from jax import lax
from jax.experimental import pallas as pl
from jax.experimental.pallas import tpu as pltpu


def _mha_kernel(xa_ref, wqkv_ref, wo_ref, bo_ref, o_ref, ctx_ref,
                *, n_head, batch, seq):
    """One invocation == the whole (B, S, D) problem.

    Fused: QKV projection (one transposed matmul, bias folded in via a ones
    column) -> per-(batch, head) scaled dot-product attention with softmax
    over keys -> single K=D output projection over the (D, B*S) context
    scratch.
    """
    xa = xa_ref[...]              # (B*S, D+1) f32; last column == 1.0
    w_qkv = wqkv_ref[...]         # (3D, D+1)  PyTorch (out, in) + bias column
    wo = wo_ref[...]              # (D, D)     PyTorch (out, in)

    D = wo.shape[0]
    d = D // n_head

    # Fused projection for Q/K/V and all batch elements, transposed
    # orientation so that heads are sublane slices:
    #   qkv_t[j, n] = sum_i w_qkv[j, i] * xa[n, i]      -> (3D, B*S)
    # Rows [0, D): scaled q;  [D, 2D): k;  [2D, 3D): v.
    qkv_t = lax.dot_general(w_qkv, xa, (((1,), (1,)), ((), ())),
                            preferred_element_type=jnp.float32)

    for b in range(batch):                  # static unroll (B*H tiny tiles)
        c0 = b * seq
        for h in range(n_head):
            r0 = h * d
            qh_t = qkv_t[r0:r0 + d, c0:c0 + seq]                  # (d, S)
            kh_t = qkv_t[D + r0:D + r0 + d, c0:c0 + seq]          # (d, S)
            vh_t = qkv_t[2 * D + r0:2 * D + r0 + d, c0:c0 + seq]  # (d, S)

            # Scores (scale already folded into q): (S, d) @ (d, S) -> (S, S)
            s = jnp.dot(qh_t.T, kh_t, preferred_element_type=jnp.float32)
            s = s - jnp.max(s, axis=-1, keepdims=True)
            p = jnp.exp(s)
            p = p / jnp.sum(p, axis=-1, keepdims=True)   # exact softmax

            # Head context, transposed ("NT" dot): (d, S_k)x(S_q, S_k)->(d, S_q)
            ctx_h_t = lax.dot_general(vh_t, p, (((1,), (1,)), ((), ())),
                                      preferred_element_type=jnp.float32)
            # 8-aligned sublane-offset store into the (D, B*S) scratch.
            ctx_ref[r0:r0 + d, c0:c0 + seq] = ctx_h_t

    # Single output projection for all heads / batch elements:
    #   o_t[j, n] = sum_i wo[j, i] * ctx_t[i, n]         -> (D, B*S)
    o_t = jnp.dot(wo, ctx_ref[...], preferred_element_type=jnp.float32)
    o_ref[...] = (o_t.T + bo_ref[...]).astype(o_ref.dtype)


def graph_multihead_attention(x, params, n_head):
    """x: (B, S, dim_q). params: PyTorch-convention (out, in) weights and
    (out,) biases. Returns (B, S, dim_q) in x.dtype. Eval-mode self-attention
    (kv=None, no masks, no cache)."""
    B, S, D = x.shape
    assert D % n_head == 0
    d = D // n_head
    BS = B * S
    scale = 1.0 / math.sqrt(d)

    # Fused QKV weight in PyTorch (out, in) layout with the bias appended as
    # an extra input column (K: D -> D+1); attention scale folded into the Q
    # block (weight AND bias) at trace time.
    w_q = jnp.concatenate([params["wq"], params["bq"][:, None]], axis=1) * scale
    w_k = jnp.concatenate([params["wk"], params["bk"][:, None]], axis=1)
    w_v = jnp.concatenate([params["wv"], params["bv"][:, None]], axis=1)
    w_qkv = jnp.concatenate([w_q, w_k, w_v], axis=0).astype(jnp.float32)  # (3D, D+1)
    wo = params["wo"].astype(jnp.float32)                                 # (D, D)
    bo = params["bo"].reshape(1, D).astype(jnp.float32)                   # (1, D)

    # Flatten batch into the lane (N) dimension of the fused projection and
    # append the ones column that carries the folded bias.
    xf = x.reshape(BS, D).astype(jnp.float32)
    x_aug = jnp.concatenate([xf, jnp.ones((BS, 1), jnp.float32)], axis=1)  # (BS, D+1)

    kernel = functools.partial(_mha_kernel, n_head=n_head, batch=B, seq=S)

    flops = (2 * BS * 3 * D * (D + 1)            # fused QKV projection
             + B * n_head * (2 * S * S * d       # q @ k^T
                             + 2 * S * S * d)    # p @ v
             + 2 * BS * D * D)                   # merged output projection
    transcendentals = B * n_head * S * S         # exp
    bytes_accessed = int(
        x_aug.size * x_aug.dtype.itemsize
        + w_qkv.size * w_qkv.dtype.itemsize
        + wo.size * wo.dtype.itemsize
        + bo.size * bo.dtype.itemsize
        + BS * D * x.dtype.itemsize)

    out2d = pl.pallas_call(
        kernel,
        out_shape=jax.ShapeDtypeStruct((BS, D), x.dtype),
        grid=(1,),
        in_specs=[
            pl.BlockSpec((BS, D + 1), lambda i: (0, 0)),    # x (+ ones col)
            pl.BlockSpec((3 * D, D + 1), lambda i: (0, 0)),  # fused QKV weight
            pl.BlockSpec((D, D), lambda i: (0, 0)),          # Wo (out, in)
            pl.BlockSpec((1, D), lambda i: (0, 0)),          # bo
        ],
        out_specs=pl.BlockSpec((BS, D), lambda i: (0, 0)),
        scratch_shapes=[pltpu.VMEM((D, BS), jnp.float32)],   # transposed ctx
        compiler_params=pltpu.CompilerParams(
            dimension_semantics=("arbitrary",)),
        cost_estimate=pl.CostEstimate(
            flops=flops, transcendentals=transcendentals,
            bytes_accessed=bytes_accessed),
    )(x_aug, w_qkv, wo, bo)

    return out2d.reshape(B, S, D)


def _reference(x, params, n_head):
    """Pure-JAX reference mirroring the PyTorch forward (kv=None, eval)."""
    B, S, D = x.shape
    d = D // n_head
    q = x @ params["wq"].T + params["bq"]
    k = x @ params["wk"].T + params["bk"]
    v = x @ params["wv"].T + params["bv"]

    def split(t):  # split_multihead: (B, S, D) -> (B, H, S, d)
        return jnp.transpose(t.reshape(B, S, n_head, d), (0, 2, 1, 3))

    q, k, v = split(q), split(k), split(v)
    attn = jnp.einsum("bhqd,bhkd->bhqk", q, k) / math.sqrt(d)
    attn = jax.nn.softmax(attn, axis=-1)
    out = jnp.einsum("bhqk,bhkd->bhqd", attn, v)
    out = jnp.transpose(out, (0, 2, 1, 3)).reshape(B, S, D)  # merge_multihead
    return out @ params["wo"].T + params["bo"]


def _init_linear(key, out_dim, in_dim):
    # Deterministic, PyTorch-Linear-style uniform(-1/sqrt(in), 1/sqrt(in)).
    kw, kb = jax.random.split(key)
    bound = 1.0 / math.sqrt(in_dim)
    w = jax.random.uniform(kw, (out_dim, in_dim), jnp.float32, -bound, bound)
    b = jax.random.uniform(kb, (out_dim,), jnp.float32, -bound, bound)
    return w, b


if __name__ == "__main__":
    # Small shapes consistent with the module: dim_q = dim_kv = 32, n_head = 4,
    # batch = 2, seq = 16.  kv=None => self-attention.
    B, S, dim_q, dim_kv, n_head = 2, 16, 32, 32, 4

    key = jax.random.PRNGKey(0)
    kx, kq, kk, kv_, ko = jax.random.split(key, 5)

    x = jax.random.normal(kx, (B, S, dim_q), jnp.float32)

    wq, bq = _init_linear(kq, dim_q, dim_q)
    wk, bk = _init_linear(kk, dim_q, dim_kv)
    wv, bv = _init_linear(kv_, dim_q, dim_kv)
    wo, bo = _init_linear(ko, dim_q, dim_q)
    params = dict(wq=wq, bq=bq, wk=wk, bk=bk, wv=wv, bv=bv, wo=wo, bo=bo)

    ref = _reference(x, params, n_head)

    out = jax.block_until_ready(graph_multihead_attention(x, params, n_head))
    assert out.shape == (B, S, dim_q)
    assert out.dtype == x.dtype
    assert jnp.allclose(out, ref, rtol=1e-4, atol=1e-4), "mismatch vs reference"

    print("KERNEL_OK")
</pallas_src>

<mosaic_0001>
module attributes {stable_mosaic.version = 11 : i64} {
  func.func @_mha_kernel(%arg0: i32, %arg1: memref<32x33xf32, #tpu.memory_space<vmem>>, %arg2: memref<96x33xf32, #tpu.memory_space<vmem>>, %arg3: memref<32x32xf32, #tpu.memory_space<vmem>>, %arg4: memref<1x32xf32, #tpu.memory_space<vmem>>, %arg5: memref<32x32xf32, #tpu.memory_space<vmem>>, %arg6: memref<32x32xf32, #tpu.memory_space<vmem>>) attributes {dimension_semantics = [#tpu.dimension_semantics<arbitrary>], iteration_bounds = array<i64: 1>, scalar_prefetch = 0 : i64, scratch_operands = 1 : i64, tpu.core_type = #tpu.core_type<tc>, window_params = [{pipeline_mode = #tpu.pipeline_mode<synchronous>, transform_indices = @transform_0, window_bounds = array<i64: 32, 33>}, {pipeline_mode = #tpu.pipeline_mode<synchronous>, transform_indices = @transform_1, window_bounds = array<i64: 96, 33>}, {pipeline_mode = #tpu.pipeline_mode<synchronous>, transform_indices = @transform_2, window_bounds = array<i64: 32, 32>}, {pipeline_mode = #tpu.pipeline_mode<synchronous>, transform_indices = @transform_3, window_bounds = array<i64: 1, 32>}, {pipeline_mode = #tpu.pipeline_mode<synchronous>, transform_indices = @transform_4, window_bounds = array<i64: 32, 32>}]} {
    %c0 = arith.constant 0 : index
    %c0_0 = arith.constant 0 : index
    %0 = vector.load %arg1[%c0, %c0_0] : memref<32x33xf32, #tpu.memory_space<vmem>>, vector<32x33xf32>
    %c0_1 = arith.constant 0 : index
    %c0_2 = arith.constant 0 : index
    %1 = vector.load %arg2[%c0_1, %c0_2] : memref<96x33xf32, #tpu.memory_space<vmem>>, vector<96x33xf32>
    %c0_3 = arith.constant 0 : index
    %c0_4 = arith.constant 0 : index
    %2 = vector.load %arg3[%c0_3, %c0_4] : memref<32x32xf32, #tpu.memory_space<vmem>>, vector<32x32xf32>
    %cst = arith.constant dense<0.000000e+00> : vector<96x32xf32>
    %3 = tpu.matmul %1, %0, %cst {dimension_numbers = #tpu.dot_dimension_numbers<[1], [1], [0], [0], [0, 0, 1, 0], [], []>} : vector<96x33xf32>, vector<32x33xf32>, vector<96x32xf32> -> vector<96x32xf32>
    %4 = vector.extract_strided_slice %3 {offsets = [0, 0], sizes = [8, 16], strides = [1, 1]} : vector<96x32xf32> to vector<8x16xf32>
    %5 = vector.extract_strided_slice %3 {offsets = [32, 0], sizes = [8, 16], strides = [1, 1]} : vector<96x32xf32> to vector<8x16xf32>
    %6 = vector.extract_strided_slice %3 {offsets = [64, 0], sizes = [8, 16], strides = [1, 1]} : vector<96x32xf32> to vector<8x16xf32>
    %7 = tpu.transpose %4, [1, 0] : vector<8x16xf32> -> vector<16x8xf32>
    %cst_5 = arith.constant dense<0.000000e+00> : vector<16x16xf32>
    %8 = tpu.matmul %7, %5, %cst_5 {dimension_numbers = #tpu.dot_dimension_numbers<[1], [0], [0], [1], [0, 0, 1, 1], [], []>} : vector<16x8xf32>, vector<8x16xf32>, vector<16x16xf32> -> vector<16x16xf32>
    %cst_6 = arith.constant dense<0xFF800000> : vector<16xf32>
    %9 = vector.multi_reduction <maximumf>, %8, %cst_6 [1] : vector<16x16xf32> to vector<16xf32>
    %10 = vector.shape_cast %9 : vector<16xf32> to vector<16x1xf32>
    %11 = vector.broadcast %10 : vector<16x1xf32> to vector<16x16xf32>
    %12 = arith.subf %8, %11 : vector<16x16xf32>
    %13 = math.exp %12 : vector<16x16xf32>
    %cst_7 = arith.constant dense<0.000000e+00> : vector<16xf32>
    %14 = vector.multi_reduction <add>, %13, %cst_7 [1] : vector<16x16xf32> to vector<16xf32>
    %15 = vector.shape_cast %14 : vector<16xf32> to vector<16x1xf32>
    %16 = vector.broadcast %15 : vector<16x1xf32> to vector<16x16xf32>
    %17 = arith.divf %13, %16 : vector<16x16xf32>
    %cst_8 = arith.constant dense<0.000000e+00> : vector<8x16xf32>
    %18 = tpu.matmul %6, %17, %cst_8 {dimension_numbers = #tpu.dot_dimension_numbers<[1], [1], [0], [0], [0, 0, 1, 0], [], []>} : vector<8x16xf32>, vector<16x16xf32>, vector<8x16xf32> -> vector<8x16xf32>
    %c0_9 = arith.constant 0 : index
    %c0_10 = arith.constant 0 : index
    %19 = vector.load %arg6[%c0_9, %c0_10] : memref<32x32xf32, #tpu.memory_space<vmem>>, vector<8x16xf32>
    tpu.vector_store %arg6[%c0_9, %c0_10], %18 {strides = array<i32>} : memref<32x32xf32, #tpu.memory_space<vmem>>, vector<8x16xf32>,
    %20 = vector.extract_strided_slice %3 {offsets = [8, 0], sizes = [8, 16], strides = [1, 1]} : vector<96x32xf32> to vector<8x16xf32>
    %21 = vector.extract_strided_slice %3 {offsets = [40, 0], sizes = [8, 16], strides = [1, 1]} : vector<96x32xf32> to vector<8x16xf32>
    %22 = vector.extract_strided_slice %3 {offsets = [72, 0], sizes = [8, 16], strides = [1, 1]} : vector<96x32xf32> to vector<8x16xf32>
    %23 = tpu.transpose %20, [1, 0] : vector<8x16xf32> -> vector<16x8xf32>
    %cst_11 = arith.constant dense<0.000000e+00> : vector<16x16xf32>
    %24 = tpu.matmul %23, %21, %cst_11 {dimension_numbers = #tpu.dot_dimension_numbers<[1], [0], [0], [1], [0, 0, 1, 1], [], []>} : vector<16x8xf32>, vector<8x16xf32>, vector<16x16xf32> -> vector<16x16xf32>
    %cst_12 = arith.constant dense<0xFF800000> : vector<16xf32>
    %25 = vector.multi_reduction <maximumf>, %24, %cst_12 [1] : vector<16x16xf32> to vector<16xf32>
    %26 = vector.shape_cast %25 : vector<16xf32> to vector<16x1xf32>
    %27 = vector.broadcast %26 : vector<16x1xf32> to vector<16x16xf32>
    %28 = arith.subf %24, %27 : vector<16x16xf32>
    %29 = math.exp %28 : vector<16x16xf32>
    %cst_13 = arith.constant dense<0.000000e+00> : vector<16xf32>
    %30 = vector.multi_reduction <add>, %29, %cst_13 [1] : vector<16x16xf32> to vector<16xf32>
    %31 = vector.shape_cast %30 : vector<16xf32> to vector<16x1xf32>
    %32 = vector.broadcast %31 : vector<16x1xf32> to vector<16x16xf32>
    %33 = arith.divf %29, %32 : vector<16x16xf32>
    %cst_14 = arith.constant dense<0.000000e+00> : vector<8x16xf32>
    %34 = tpu.matmul %22, %33, %cst_14 {dimension_numbers = #tpu.dot_dimension_numbers<[1], [1], [0], [0], [0, 0, 1, 0], [], []>} : vector<8x16xf32>, vector<16x16xf32>, vector<8x16xf32> -> vector<8x16xf32>
    %c8 = arith.constant 8 : index
    %c0_15 = arith.constant 0 : index
    %35 = vector.load %arg6[%c8, %c0_15] : memref<32x32xf32, #tpu.memory_space<vmem>>, vector<8x16xf32>
    tpu.vector_store %arg6[%c8, %c0_15], %34 {strides = array<i32>} : memref<32x32xf32, #tpu.memory_space<vmem>>, vector<8x16xf32>,
    %36 = vector.extract_strided_slice %3 {offsets = [16, 0], sizes = [8, 16], strides = [1, 1]} : vector<96x32xf32> to vector<8x16xf32>
    %37 = vector.extract_strided_slice %3 {offsets = [48, 0], sizes = [8, 16], strides = [1, 1]} : vector<96x32xf32> to vector<8x16xf32>
    %38 = vector.extract_strided_slice %3 {offsets = [80, 0], sizes = [8, 16], strides = [1, 1]} : vector<96x32xf32> to vector<8x16xf32>
    %39 = tpu.transpose %36, [1, 0] : vector<8x16xf32> -> vector<16x8xf32>
    %cst_16 = arith.constant dense<0.000000e+00> : vector<16x16xf32>
    %40 = tpu.matmul %39, %37, %cst_16 {dimension_numbers = #tpu.dot_dimension_numbers<[1], [0], [0], [1], [0, 0, 1, 1], [], []>} : vector<16x8xf32>, vector<8x16xf32>, vector<16x16xf32> -> vector<16x16xf32>
    %cst_17 = arith.constant dense<0xFF800000> : vector<16xf32>
    %41 = vector.multi_reduction <maximumf>, %40, %cst_17 [1] : vector<16x16xf32> to vector<16xf32>
    %42 = vector.shape_cast %41 : vector<16xf32> to vector<16x1xf32>
    %43 = vector.broadcast %42 : vector<16x1xf32> to vector<16x16xf32>
    %44 = arith.subf %40, %43 : vector<16x16xf32>
    %45 = math.exp %44 : vector<16x16xf32>
    %cst_18 = arith.constant dense<0.000000e+00> : vector<16xf32>
    %46 = vector.multi_reduction <add>, %45, %cst_18 [1] : vector<16x16xf32> to vector<16xf32>
    %47 = vector.shape_cast %46 : vector<16xf32> to vector<16x1xf32>
    %48 = vector.broadcast %47 : vector<16x1xf32> to vector<16x16xf32>
    %49 = arith.divf %45, %48 : vector<16x16xf32>
    %cst_19 = arith.constant dense<0.000000e+00> : vector<8x16xf32>
    %50 = tpu.matmul %38, %49, %cst_19 {dimension_numbers = #tpu.dot_dimension_numbers<[1], [1], [0], [0], [0, 0, 1, 0], [], []>} : vector<8x16xf32>, vector<16x16xf32>, vector<8x16xf32> -> vector<8x16xf32>
    %c16 = arith.constant 16 : index
    %c0_20 = arith.constant 0 : index
    %51 = vector.load %arg6[%c16, %c0_20] : memref<32x32xf32, #tpu.memory_space<vmem>>, vector<8x16xf32>
    tpu.vector_store %arg6[%c16, %c0_20], %50 {strides = array<i32>} : memref<32x32xf32, #tpu.memory_space<vmem>>, vector<8x16xf32>,
    %52 = vector.extract_strided_slice %3 {offsets = [24, 0], sizes = [8, 16], strides = [1, 1]} : vector<96x32xf32> to vector<8x16xf32>
    %53 = vector.extract_strided_slice %3 {offsets = [56, 0], sizes = [8, 16], strides = [1, 1]} : vector<96x32xf32> to vector<8x16xf32>
    %54 = vector.extract_strided_slice %3 {offsets = [88, 0], sizes = [8, 16], strides = [1, 1]} : vector<96x32xf32> to vector<8x16xf32>
    %55 = tpu.transpose %52, [1, 0] : vector<8x16xf32> -> vector<16x8xf32>
    %cst_21 = arith.constant dense<0.000000e+00> : vector<16x16xf32>
    %56 = tpu.matmul %55, %53, %cst_21 {dimension_numbers = #tpu.dot_dimension_numbers<[1], [0], [0], [1], [0, 0, 1, 1], [], []>} : vector<16x8xf32>, vector<8x16xf32>, vector<16x16xf32> -> vector<16x16xf32>
    %cst_22 = arith.constant dense<0xFF800000> : vector<16xf32>
    %57 = vector.multi_reduction <maximumf>, %56, %cst_22 [1] : vector<16x16xf32> to vector<16xf32>
    %58 = vector.shape_cast %57 : vector<16xf32> to vector<16x1xf32>
    %59 = vector.broadcast %58 : vector<16x1xf32> to vector<16x16xf32>
    %60 = arith.subf %56, %59 : vector<16x16xf32>
    %61 = math.exp %60 : vector<16x16xf32>
    %cst_23 = arith.constant dense<0.000000e+00> : vector<16xf32>
    %62 = vector.multi_reduction <add>, %61, %cst_23 [1] : vector<16x16xf32> to vector<16xf32>
    %63 = vector.shape_cast %62 : vector<16xf32> to vector<16x1xf32>
    %64 = vector.broadcast %63 : vector<16x1xf32> to vector<16x16xf32>
    %65 = arith.divf %61, %64 : vector<16x16xf32>
    %cst_24 = arith.constant dense<0.000000e+00> : vector<8x16xf32>
    %66 = tpu.matmul %54, %65, %cst_24 {dimension_numbers = #tpu.dot_dimension_numbers<[1], [1], [0], [0], [0, 0, 1, 0], [], []>} : vector<8x16xf32>, vector<16x16xf32>, vector<8x16xf32> -> vector<8x16xf32>
    %c24 = arith.constant 24 : index
    %c0_25 = arith.constant 0 : index
    %67 = vector.load %arg6[%c24, %c0_25] : memref<32x32xf32, #tpu.memory_space<vmem>>, vector<8x16xf32>
    tpu.vector_store %arg6[%c24, %c0_25], %66 {strides = array<i32>} : memref<32x32xf32, #tpu.memory_space<vmem>>, vector<8x16xf32>,
    %68 = vector.extract_strided_slice %3 {offsets = [0, 16], sizes = [8, 16], strides = [1, 1]} : vector<96x32xf32> to vector<8x16xf32>
    %69 = vector.extract_strided_slice %3 {offsets = [32, 16], sizes = [8, 16], strides = [1, 1]} : vector<96x32xf32> to vector<8x16xf32>
    %70 = vector.extract_strided_slice %3 {offsets = [64, 16], sizes = [8, 16], strides = [1, 1]} : vector<96x32xf32> to vector<8x16xf32>
    %71 = tpu.transpose %68, [1, 0] : vector<8x16xf32> -> vector<16x8xf32>
    %cst_26 = arith.constant dense<0.000000e+00> : vector<16x16xf32>
    %72 = tpu.matmul %71, %69, %cst_26 {dimension_numbers = #tpu.dot_dimension_numbers<[1], [0], [0], [1], [0, 0, 1, 1], [], []>} : vector<16x8xf32>, vector<8x16xf32>, vector<16x16xf32> -> vector<16x16xf32>
    %cst_27 = arith.constant dense<0xFF800000> : vector<16xf32>
    %73 = vector.multi_reduction <maximumf>, %72, %cst_27 [1] : vector<16x16xf32> to vector<16xf32>
    %74 = vector.shape_cast %73 : vector<16xf32> to vector<16x1xf32>
    %75 = vector.broadcast %74 : vector<16x1xf32> to vector<16x16xf32>
    %76 = arith.subf %72, %75 : vector<16x16xf32>
    %77 = math.exp %76 : vector<16x16xf32>
    %cst_28 = arith.constant dense<0.000000e+00> : vector<16xf32>
    %78 = vector.multi_reduction <add>, %77, %cst_28 [1] : vector<16x16xf32> to vector<16xf32>
    %79 = vector.shape_cast %78 : vector<16xf32> to vector<16x1xf32>
    %80 = vector.broadcast %79 : vector<16x1xf32> to vector<16x16xf32>
    %81 = arith.divf %77, %80 : vector<16x16xf32>
    %cst_29 = arith.constant dense<0.000000e+00> : vector<8x16xf32>
    %82 = tpu.matmul %70, %81, %cst_29 {dimension_numbers = #tpu.dot_dimension_numbers<[1], [1], [0], [0], [0, 0, 1, 0], [], []>} : vector<8x16xf32>, vector<16x16xf32>, vector<8x16xf32> -> vector<8x16xf32>
    %c0_30 = arith.constant 0 : index
    %c16_31 = arith.constant 16 : index
    %83 = vector.load %arg6[%c0_30, %c16_31] : memref<32x32xf32, #tpu.memory_space<vmem>>, vector<8x16xf32>
    tpu.vector_store %arg6[%c0_30, %c16_31], %82 {strides = array<i32>} : memref<32x32xf32, #tpu.memory_space<vmem>>, vector<8x16xf32>,
    %84 = vector.extract_strided_slice %3 {offsets = [8, 16], sizes = [8, 16], strides = [1, 1]} : vector<96x32xf32> to vector<8x16xf32>
    %85 = vector.extract_strided_slice %3 {offsets = [40, 16], sizes = [8, 16], strides = [1, 1]} : vector<96x32xf32> to vector<8x16xf32>
    %86 = vector.extract_strided_slice %3 {offsets = [72, 16], sizes = [8, 16], strides = [1, 1]} : vector<96x32xf32> to vector<8x16xf32>
    %87 = tpu.transpose %84, [1, 0] : vector<8x16xf32> -> vector<16x8xf32>
    %cst_32 = arith.constant dense<0.000000e+00> : vector<16x16xf32>
    %88 = tpu.matmul %87, %85, %cst_32 {dimension_numbers = #tpu.dot_dimension_numbers<[1], [0], [0], [1], [0, 0, 1, 1], [], []>} : vector<16x8xf32>, vector<8x16xf32>, vector<16x16xf32> -> vector<16x16xf32>
    %cst_33 = arith.constant dense<0xFF800000> : vector<16xf32>
    %89 = vector.multi_reduction <maximumf>, %88, %cst_33 [1] : vector<16x16xf32> to vector<16xf32>
    %90 = vector.shape_cast %89 : vector<16xf32> to vector<16x1xf32>
    %91 = vector.broadcast %90 : vector<16x1xf32> to vector<16x16xf32>
    %92 = arith.subf %88, %91 : vector<16x16xf32>
    %93 = math.exp %92 : vector<16x16xf32>
    %cst_34 = arith.constant dense<0.000000e+00> : vector<16xf32>
    %94 = vector.multi_reduction <add>, %93, %cst_34 [1] : vector<16x16xf32> to vector<16xf32>
    %95 = vector.shape_cast %94 : vector<16xf32> to vector<16x1xf32>
    %96 = vector.broadcast %95 : vector<16x1xf32> to vector<16x16xf32>
    %97 = arith.divf %93, %96 : vector<16x16xf32>
    %cst_35 = arith.constant dense<0.000000e+00> : vector<8x16xf32>
    %98 = tpu.matmul %86, %97, %cst_35 {dimension_numbers = #tpu.dot_dimension_numbers<[1], [1], [0], [0], [0, 0, 1, 0], [], []>} : vector<8x16xf32>, vector<16x16xf32>, vector<8x16xf32> -> vector<8x16xf32>
    %c8_36 = arith.constant 8 : index
    %c16_37 = arith.constant 16 : index
    %99 = vector.load %arg6[%c8_36, %c16_37] : memref<32x32xf32, #tpu.memory_space<vmem>>, vector<8x16xf32>
    tpu.vector_store %arg6[%c8_36, %c16_37], %98 {strides = array<i32>} : memref<32x32xf32, #tpu.memory_space<vmem>>, vector<8x16xf32>,
    %100 = vector.extract_strided_slice %3 {offsets = [16, 16], sizes = [8, 16], strides = [1, 1]} : vector<96x32xf32> to vector<8x16xf32>
    %101 = vector.extract_strided_slice %3 {offsets = [48, 16], sizes = [8, 16], strides = [1, 1]} : vector<96x32xf32> to vector<8x16xf32>
    %102 = vector.extract_strided_slice %3 {offsets = [80, 16], sizes = [8, 16], strides = [1, 1]} : vector<96x32xf32> to vector<8x16xf32>
    %103 = tpu.transpose %100, [1, 0] : vector<8x16xf32> -> vector<16x8xf32>
    %cst_38 = arith.constant dense<0.000000e+00> : vector<16x16xf32>
    %104 = tpu.matmul %103, %101, %cst_38 {dimension_numbers = #tpu.dot_dimension_numbers<[1], [0], [0], [1], [0, 0, 1, 1], [], []>} : vector<16x8xf32>, vector<8x16xf32>, vector<16x16xf32> -> vector<16x16xf32>
    %cst_39 = arith.constant dense<0xFF800000> : vector<16xf32>
    %105 = vector.multi_reduction <maximumf>, %104, %cst_39 [1] : vector<16x16xf32> to vector<16xf32>
    %106 = vector.shape_cast %105 : vector<16xf32> to vector<16x1xf32>
    %107 = vector.broadcast %106 : vector<16x1xf32> to vector<16x16xf32>
    %108 = arith.subf %104, %107 : vector<16x16xf32>
    %109 = math.exp %108 : vector<16x16xf32>
    %cst_40 = arith.constant dense<0.000000e+00> : vector<16xf32>
    %110 = vector.multi_reduction <add>, %109, %cst_40 [1] : vector<16x16xf32> to vector<16xf32>
    %111 = vector.shape_cast %110 : vector<16xf32> to vector<16x1xf32>
    %112 = vector.broadcast %111 : vector<16x1xf32> to vector<16x16xf32>
    %113 = arith.divf %109, %112 : vector<16x16xf32>
    %cst_41 = arith.constant dense<0.000000e+00> : vector<8x16xf32>
    %114 = tpu.matmul %102, %113, %cst_41 {dimension_numbers = #tpu.dot_dimension_numbers<[1], [1], [0], [0], [0, 0, 1, 0], [], []>} : vector<8x16xf32>, vector<16x16xf32>, vector<8x16xf32> -> vector<8x16xf32>
    %c16_42 = arith.constant 16 : index
    %c16_43 = arith.constant 16 : index
    %115 = vector.load %arg6[%c16_42, %c16_43] : memref<32x32xf32, #tpu.memory_space<vmem>>, vector<8x16xf32>
    tpu.vector_store %arg6[%c16_42, %c16_43], %114 {strides = array<i32>} : memref<32x32xf32, #tpu.memory_space<vmem>>, vector<8x16xf32>,
    %116 = vector.extract_strided_slice %3 {offsets = [24, 16], sizes = [8, 16], strides = [1, 1]} : vector<96x32xf32> to vector<8x16xf32>
    %117 = vector.extract_strided_slice %3 {offsets = [56, 16], sizes = [8, 16], strides = [1, 1]} : vector<96x32xf32> to vector<8x16xf32>
    %118 = vector.extract_strided_slice %3 {offsets = [88, 16], sizes = [8, 16], strides = [1, 1]} : vector<96x32xf32> to vector<8x16xf32>
    %119 = tpu.transpose %116, [1, 0] : vector<8x16xf32> -> vector<16x8xf32>
    %cst_44 = arith.constant dense<0.000000e+00> : vector<16x16xf32>
    %120 = tpu.matmul %119, %117, %cst_44 {dimension_numbers = #tpu.dot_dimension_numbers<[1], [0], [0], [1], [0, 0, 1, 1], [], []>} : vector<16x8xf32>, vector<8x16xf32>, vector<16x16xf32> -> vector<16x16xf32>
    %cst_45 = arith.constant dense<0xFF800000> : vector<16xf32>
    %121 = vector.multi_reduction <maximumf>, %120, %cst_45 [1] : vector<16x16xf32> to vector<16xf32>
    %122 = vector.shape_cast %121 : vector<16xf32> to vector<16x1xf32>
    %123 = vector.broadcast %122 : vector<16x1xf32> to vector<16x16xf32>
    %124 = arith.subf %120, %123 : vector<16x16xf32>
    %125 = math.exp %124 : vector<16x16xf32>
    %cst_46 = arith.constant dense<0.000000e+00> : vector<16xf32>
    %126 = vector.multi_reduction <add>, %125, %cst_46 [1] : vector<16x16xf32> to vector<16xf32>
    %127 = vector.shape_cast %126 : vector<16xf32> to vector<16x1xf32>
    %128 = vector.broadcast %127 : vector<16x1xf32> to vector<16x16xf32>
    %129 = arith.divf %125, %128 : vector<16x16xf32>
    %cst_47 = arith.constant dense<0.000000e+00> : vector<8x16xf32>
    %130 = tpu.matmul %118, %129, %cst_47 {dimension_numbers = #tpu.dot_dimension_numbers<[1], [1], [0], [0], [0, 0, 1, 0], [], []>} : vector<8x16xf32>, vector<16x16xf32>, vector<8x16xf32> -> vector<8x16xf32>
    %c24_48 = arith.constant 24 : index
    %c16_49 = arith.constant 16 : index
    %131 = vector.load %arg6[%c24_48, %c16_49] : memref<32x32xf32, #tpu.memory_space<vmem>>, vector<8x16xf32>
    tpu.vector_store %arg6[%c24_48, %c16_49], %130 {strides = array<i32>} : memref<32x32xf32, #tpu.memory_space<vmem>>, vector<8x16xf32>,
    %c0_50 = arith.constant 0 : index
    %c0_51 = arith.constant 0 : index
    %132 = vector.load %arg6[%c0_50, %c0_51] : memref<32x32xf32, #tpu.memory_space<vmem>>, vector<32x32xf32>
    %cst_52 = arith.constant dense<0.000000e+00> : vector<32x32xf32>
    %133 = tpu.matmul %2, %132, %cst_52 {dimension_numbers = #tpu.dot_dimension_numbers<[1], [0], [0], [1], [0, 0, 1, 1], [], []>} : vector<32x32xf32>, vector<32x32xf32>, vector<32x32xf32> -> vector<32x32xf32>
    %134 = tpu.transpose %133, [1, 0] : vector<32x32xf32> -> vector<32x32xf32>
    %c0_53 = arith.constant 0 : index
    %c0_54 = arith.constant 0 : index
    %135 = vector.load %arg4[%c0_53, %c0_54] : memref<1x32xf32, #tpu.memory_space<vmem>>, vector<1x32xf32>
    %136 = vector.broadcast %135 : vector<1x32xf32> to vector<32x32xf32>
    %137 = arith.addf %134, %136 : vector<32x32xf32>
    %c0_55 = arith.constant 0 : index
    %c0_56 = arith.constant 0 : index
    %138 = vector.load %arg5[%c0_55, %c0_56] : memref<32x32xf32, #tpu.memory_space<vmem>>, vector<32x32xf32>
    tpu.vector_store %arg5[%c0_55, %c0_56], %137 {strides = array<i32>} : memref<32x32xf32, #tpu.memory_space<vmem>>, vector<32x32xf32>,
    return
  }
  func.func @transform_0(%arg0: i32) -> (i32, i32) {
    %c0_i32 = arith.constant 0 : i32
    %c0_i32_0 = arith.constant 0 : i32
    %c0_i32_1 = arith.constant 0 : i32
    return %c0_i32, %c0_i32_0 : i32, i32
  }
  func.func @transform_1(%arg0: i32) -> (i32, i32) {
    %c0_i32 = arith.constant 0 : i32
    %c0_i32_0 = arith.constant 0 : i32
    %c0_i32_1 = arith.constant 0 : i32
    return %c0_i32, %c0_i32_0 : i32, i32
  }
  func.func @transform_2(%arg0: i32) -> (i32, i32) {
    %c0_i32 = arith.constant 0 : i32
    %c0_i32_0 = arith.constant 0 : i32
    %c0_i32_1 = arith.constant 0 : i32
    return %c0_i32, %c0_i32_0 : i32, i32
  }
  func.func @transform_3(%arg0: i32) -> (i32, i32) {
    %c0_i32 = arith.constant 0 : i32
    %c0_i32_0 = arith.constant 0 : i32
    %c0_i32_1 = arith.constant 0 : i32
    return %c0_i32, %c0_i32_0 : i32, i32
  }
  func.func @transform_4(%arg0: i32) -> (i32, i32) {
    %c0_i32 = arith.constant 0 : i32
    %c0_i32_0 = arith.constant 0 : i32
    %c0_i32_1 = arith.constant 0 : i32
    return %c0_i32, %c0_i32_0 : i32, i32
  }
}

</mosaic_0001>

<bundles_post_ra>
// kernel: tpu_custom_call.1
= control target key start
LH: loop header
LB: loop body
LE: loop exit
PB: predicated region body
PF: predicated region fallthrough
CT: control target
= control target key end

     0   :  { %vm38_vm0 = vcmask 269312   ;;  %s2831_s0 = inlined_call_operand.vmem [shape: f32[32,33], index: 0, kind: input, shape index: {}]   ;;  %s2832_s1 = inlined_call_operand.vmem [shape: f32[96,33], index: 1, kind: input, shape index: {}]   ;;  %s2833_s2 = inlined_call_operand.vmem [shape: f32[32,32], index: 2, kind: input, shape index: {}]   ;;  %s2834_s3 = inlined_call_operand.vmem [shape: f32[1,32], index: 3, kind: input, shape index: {}]   ;;  %s2835_s4 = inlined_call_operand.hbm [shape: f32[32,32], index: 4, kind: output, shape index: {}]  }
   0x1   :  { %v21_v0 = vld [vmem:[%s2831_s0 + $0x18] sm:$0xff]  ;;  %v20_v1 = vld [vmem:[%s2831_s0 + $0x10] sm:$0xff]  ;;  %v22_v2 = vld [vmem:[%s2832_s1] sm:$0xff] }
   0x2   :  { %2285 = vmatprep.subr.msk.mxu0 %vm38_vm0, %v21_v0  ;;  %2293 = vmatprep.mubr.msk.f32.mxu0 %vm38_vm0, %v22_v2 }
   0x3   :  { %2286 = vmatpush3.xpose.msk.msra.mxu0 %vm38_vm0, %v21_v0 }
   0x4   :  { %2287 = vmatprep.subr.msk.mxu0 %vm38_vm0, %v20_v1 }
   0x5   :  { %9 = vsyncpa [#allocation4], 0  ;;  %v19_v3 = vld [vmem:[%s2831_s0 + $0x8] sm:$0xff]  ;;  %v18_v4 = vld [vmem:[%s2831_s0] sm:$0xff]  ;;  %vm244_vm1 = vcmask 64512   ;;  %vm326_vm2 = vcmask 130048  }
   0x6   :  { %v23_v5 = vld [vmem:[%s2832_s1 + $0x8] sm:$0xff]  ;;  %v24_v6 = vld [vmem:[%s2832_s1 + $0x10] sm:$0xff]  ;;  %v25_v7 = vld [vmem:[%s2832_s1 + $0x18] sm:$0xff]  ;;  %v2514_v36 = vmov 0.0   ;;  %vm2515_vm3 = vmmov 0   ;;  %s2517_s20 = smov 16  }
   0x7   :  { %2288 = vmatpush3.xpose.msk.msra.mxu0 %vm38_vm0, %v20_v1  ;;  %v26_v8 = vld [vmem:[%s2832_s1 + $0x20] sm:$0xff]  ;;  %v27_v9 = vld [vmem:[%s2832_s1 + $0x28] sm:$0xff]  ;;  %v28_v18 = vld [vmem:[%s2832_s1 + $0x30] sm:$0xff]  ;;  %vm1991_vm4 = vcmask 261120   ;;  %vm1301_vm5 = vcmask 261248  }
   0x8   :  { %2289 = vmatprep.subr.msk.mxu0 %vm38_vm0, %v19_v3  ;;  %v29_v19 = vld [vmem:[%s2832_s1 + $0x38] sm:$0xff]  ;;  %v30_v20 = vld [vmem:[%s2832_s1 + $0x40] sm:$0xff]  ;;  %v31_v21 = vld [vmem:[%s2832_s1 + $0x48] sm:$0xff] }
   0xb   :  { %2290 = vmatpush3.xpose.msk.msra.mxu0 %vm38_vm0, %v19_v3 }
   0xc   :  { %2291 = vmatprep.subr.msk.mxu0 %vm38_vm0, %v18_v4 }
   0xf   :  { %2292 = vmatpush3.xpose.msk.msra.mxu0 %vm38_vm0, %v18_v4 }
  0x10   :  { %2352 = vmatprep.subr.mxu0 %v2514_v36 }
  0x12   :  { %2294 = vmatmul.mubr.msk.f32.vlgmr.msra.gmra.mxu0 %vm38_vm0, %v23_v5 }
  0x13   :  { %2296 = vmatprep.mubr.msk.f32.mxu0 %vm38_vm0, %v24_v6 }
  0x16   :  { %2297 = vmatmul.mubr.msk.f32.gmra.mxu0 %vm38_vm0, %v25_v7 }
  0x17   :  { %2299 = vmatprep.mubr.msk.f32.mxu0 %vm38_vm0, %v26_v8 }
  0x1a   :  { %2300 = vmatmul.mubr.msk.f32.gmra.mxu0 %vm38_vm0, %v27_v9  ;;  %v32_v9 = vld [vmem:[%s2832_s1 + $0x50] sm:$0xff] }
  0x1b   :  { %2302 = vmatprep.mubr.msk.f32.mxu0 %vm38_vm0, %v28_v18 }
  0x1e   :  { %2303 = vmatmul.mubr.msk.f32.gmra.mxu0 %vm38_vm0, %v29_v19 }
  0x1f   :  { %2305 = vmatprep.mubr.msk.f32.mxu0 %vm38_vm0, %v30_v20 }
  0x22   :  { %2306 = vmatmul.mubr.msk.f32.gmra.mxu0 %vm38_vm0, %v31_v21 }
  0x23   :  { %2308 = vmatprep.mubr.msk.f32.mxu0 %vm38_vm0, %v32_v9 }
  0xd2   :  { %v2590_v10 = vpop.f32.mrf.mxu0 }
  0xd4   :  { %v2592_v11 = vpop.f32.mrf.mxu0 }
  0xd5   :  { %212 = vxpose.xlu0.b32.start.end [1/1] (short) (narrow) %v2592_v11, 16 }
  0xd6   :  { %v2595_v12 = vpop.f32.mrf.mxu0 }
  0xd8   :  { %v2597_v13 = vpop.f32.mrf.mxu0 }
  0xda   :  { %v2599_v14 = vpop.f32.mrf.mxu0 }
  0xdc   :  { %v2601_v15 = vpop.f32.mrf.mxu0 }
  0xdd   :  { %2311 = vmatprep.subr.mxu1 %v2601_v15 }
  0xde   :  { %2312 = vmatpush3.msra.mxu1 %v2601_v15  ;;  %v2632_v39 = vpop.f32.mrf.mxu0 }
  0xdf   :  { %2316 = vmatprep.subr.mxu1 %v2514_v36 }
  0xe0   :  { %v2634_v40 = vpop.f32.mrf.mxu0 }
  0xe2   :  { %v2637_v43 = vpop.f32.mrf.mxu0 }
  0xe4   :  { %v2641_v46 = vpop.f32.mrf.mxu0 }
 0x151   :  { %v228_v16 = vpop.trf.xlu0 }
 0x152   :  { %2313 = vmatprep.mubr.msk.f32.mxu1 %vm244_vm1, %v228_v16  ;;  %v33_v16 = vld [vmem:[%s2832_s1 + $0x58] sm:$0xff]  ;;  %s2516_s1 = smov 112  }
 0x153   :  { %2309 = vmatmul.mubr.msk.f32.gmra.mxu0 %vm38_vm0, %v33_v16 }
 0x154   :  { %2356 = vmatprep.mubr.msk.f32.mxu0 %vm2515_vm3, %v2514_v36 }
 0x155   :  { %v229_v17 = vpop.trf.xlu0 }
 0x156   :  { %2314 = vmatmul.mubr.msk.f32.vlgmr.msra.gmra.mxu1 %vm244_vm1, %v229_v17 }
 0x157   :  { %2320 = vmatprep.mubr.msk.f32.mxu1 %vm2515_vm3, %v2514_v36 }
 0x216   :  { %v2315_v22 = vpop.f32.mrf.mxu1 }
 0x217   :  { %v330_v23 = vsel %vm326_vm2, %v2315_v22, -inf }
 0x218   :  { %331 = vmax.xlane.f32.xlu0 %v330_v23  ;;  %v317_v24 = vpop.f32.mrf.mxu1 }
 0x219   :  { %v327_v25 = vsel %vm326_vm2, %v317_v24, -inf }
 0x21a   :  { %328 = vmax.xlane.f32.xlu1 %v327_v25 }
 0x2a1   :  { %v332_v26 = vpop.xlane.xlu0 %331 }
 0x2a2   :  { %v334_v27 = vsub.f32 %v2315_v22, %v332_v26 }
 0x2a3   :  { %v329_v28 = vpop.xlane.xlu1 %328 }
 0x2a4   :  { %v337_v29 = vmul.f32 1.442695, %v334_v27  ;;  %v333_v30 = vsub.f32 %v317_v24, %v329_v28 }
 0x2a6   :  { %2428 = vpow2.f32 %v337_v29  ;;  %v335_v31 = vmul.f32 1.442695, %v333_v30 }
 0x2a8   :  { %2430 = vpow2.f32 %v335_v31 }
 0x2b3   :  { %v2429_v32 = vpop.eup %2428 }
 0x2b4   :  { %v342_v33 = vsel %vm326_vm2, %v2429_v32, 0.0 }
 0x2b5   :  { %v2431_v34 = vpop.eup %2430  ;;  %343 = vadd.xlane.f32.xlu1 %v342_v33 }
 0x2b6   :  { %v339_v35 = vsel %vm326_vm2, %v2431_v34, 0.0 }
 0x2b9   :  { %340 = vadd.xlane.f32.xlu1 %v339_v35 }
 0x2ec   :  { %429 = vxpose.xlu1.b32.start.end [1/1] (short) (narrow) %v2590_v10, 16 }
 0x33e   :  { %v344_v37 = vpop.xlane.xlu1 %343 }
 0x33f   :  { %2432 = vrcp.f32 %v344_v37 }
 0x342   :  { %v341_v38 = vpop.xlane.xlu1 %340 }
 0x343   :  { %2434 = vrcp.f32 %v341_v38  ;;  %v2695_v38 = vpop.f32.mrf.mxu0 }
 0x34c   :  { %v2433_v41 = vpop.eup %2432 }
 0x34d   :  { %v348_v42 = vmul.f32 %v2433_v41, %v2429_v32 }
 0x34f   :  { %2317 = vmatpush3.xpose.msk.msra.mxu1 %vm326_vm2, %v348_v42 }
 0x350   :  { %v2435_v44 = vpop.eup %2434  ;;  %2318 = vmatprep.subr.mxu1 %v2514_v36 }
 0x351   :  { %v346_v45 = vmul.f32 %v2435_v44, %v2431_v34 }
 0x353   :  { %2319 = vmatpush3.xpose.msk.msra.mxu1 %vm326_vm2, %v346_v45 }
 0x354   :  { %2323 = vmatprep.subr.mxu1 %v2599_v14 }
 0x356   :  { %2321 = vmatmul.mubr.msk.f32.vlgmr.msra.gmra.mxu1 %vm326_vm2, %v2641_v46 }
 0x357   :  { %2324 = vmatpush3.msra.mxu1 %v2599_v14 }
 0x358   :  { %2328 = vmatprep.subr.mxu1 %v2514_v36 }
 0x368   :  { %v445_v47 = vpop.trf.xlu1 }
 0x369   :  { %2325 = vmatprep.mubr.msk.f32.mxu1 %vm244_vm1, %v445_v47 }
 0x36c   :  { %v446_v48 = vpop.trf.xlu1 }
 0x36d   :  { %2326 = vmatmul.mubr.msk.f32.vlgmr.msra.gmra.mxu1 %vm244_vm1, %v446_v48 }
 0x36e   :  { %2332 = vmatprep.mubr.msk.f32.mxu1 %vm2515_vm3, %v2514_v36 }
 0x416   :  { %v424_v49 = vpop.f32.mrf.mxu1 }
 0x417   :  { %428 = vst.msk [vmem:[#allocation2] sm:$0xff] %vm326_vm2, %v424_v49 }
 0x418   :  { %v2322_v50 = vpop.f32.mrf.mxu1 }
 0x42d   :  { %v2327_v51 = vpop.f32.mrf.mxu1 }
 0x42e   :  { %v545_v52 = vsel %vm326_vm2, %v2327_v51, -inf }
 0x42f   :  { %546 = vmax.xlane.f32.xlu0 %v545_v52  ;;  %v533_v53 = vpop.f32.mrf.mxu1 }
 0x430   :  { %v542_v54 = vsel %vm326_vm2, %v533_v53, -inf }
 0x433   :  { %543 = vmax.xlane.f32.xlu0 %v542_v54 }
 0x4b8   :  { %v547_v55 = vpop.xlane.xlu0 %546 }
 0x4b9   :  { %v549_v56 = vsub.f32 %v2327_v51, %v547_v55 }
 0x4bb   :  { %v552_v57 = vmul.f32 1.442695, %v549_v56 }
 0x4bc   :  { %v544_v58 = vpop.xlane.xlu0 %543 }
 0x4bd   :  { %2436 = vpow2.f32 %v552_v57  ;;  %v548_v59 = vsub.f32 %v533_v53, %v544_v58 }
 0x4bf   :  { %v550_v60 = vmul.f32 1.442695, %v548_v59 }
 0x4c1   :  { %2438 = vpow2.f32 %v550_v60 }
 0x4ca   :  { %v2437_v61 = vpop.eup %2436 }
 0x4cb   :  { %v557_v62 = vsel %vm326_vm2, %v2437_v61, 0.0 }
 0x4cc   :  { %558 = vadd.xlane.f32.xlu0 %v557_v62 }
 0x4ce   :  { %v2439_v63 = vpop.eup %2438 }
 0x4cf   :  { %v554_v0 = vsel %vm326_vm2, %v2439_v63, 0.0 }
 0x4d0   :  { %555 = vadd.xlane.f32.xlu1 %v554_v0 }
 0x4f9   :  { %644 = vxpose.xlu0.b32.start.end [1/1] (short) (narrow) %v2597_v13, 16 }
 0x555   :  { %v559_v1 = vpop.xlane.xlu0 %558 }
 0x556   :  { %2440 = vrcp.f32 %v559_v1 }
 0x559   :  { %v556_v2 = vpop.xlane.xlu1 %555 }
 0x55a   :  { %2442 = vrcp.f32 %v556_v2 }
 0x563   :  { %v2441_v3 = vpop.eup %2440 }
 0x564   :  { %v563_v4 = vmul.f32 %v2441_v3, %v2437_v61 }
 0x566   :  { %2329 = vmatpush3.xpose.msk.msra.mxu1 %vm326_vm2, %v563_v4 }
 0x567   :  { %v2443_v5 = vpop.eup %2442  ;;  %2330 = vmatprep.subr.mxu1 %v2514_v36 }
 0x568   :  { %v561_v6 = vmul.f32 %v2443_v5, %v2439_v63 }
 0x56a   :  { %2331 = vmatpush3.xpose.msk.msra.mxu1 %vm326_vm2, %v561_v6 }
 0x56b   :  { %2335 = vmatprep.subr.mxu1 %v2634_v40 }
 0x56d   :  { %2333 = vmatmul.mubr.msk.f32.vlgmr.msra.gmra.mxu1 %vm326_vm2, %v2637_v43 }
 0x56e   :  { %2336 = vmatpush3.msra.mxu1 %v2634_v40 }
 0x56f   :  { %2340 = vmatprep.subr.mxu1 %v2514_v36 }
 0x575   :  { %v660_v7 = vpop.trf.xlu0 }
 0x576   :  { %2337 = vmatprep.mubr.msk.f32.mxu1 %vm244_vm1, %v660_v7 }
 0x579   :  { %v661_v8 = vpop.trf.xlu0 }
 0x57a   :  { %2338 = vmatmul.mubr.msk.f32.vlgmr.msra.gmra.mxu1 %vm244_vm1, %v661_v8 }
 0x57b   :  { %2344 = vmatprep.mubr.msk.f32.mxu1 %vm2515_vm3, %v2514_v36 }
 0x62d   :  { %v639_v17 = vpop.f32.mrf.mxu1 }
 0x62e   :  { %643 = vst.msk [vmem:[#allocation2 + $0x8] sm:$0xff] %vm326_vm2, %v639_v17 }
 0x62f   :  { %v2334_v18 = vpop.f32.mrf.mxu1 }
 0x63a   :  { %v2339_v19 = vpop.f32.mrf.mxu1 }
 0x63b   :  { %v760_v20 = vsel %vm326_vm2, %v2339_v19, -inf }
 0x63c   :  { %761 = vmax.xlane.f32.xlu1 %v760_v20  ;;  %v748_v21 = vpop.f32.mrf.mxu1 }
 0x63d   :  { %v757_v22 = vsel %vm326_vm2, %v748_v21, -inf }
 0x63e   :  { %758 = vmax.xlane.f32.xlu0 %v757_v22 }
 0x64d   :  { %1075 = vrot.lane.b32.xlu1 %v2592_v11, %s2516_s1 }
 0x651   :  { %1304 = vrot.lane.b32.xlu1 %v2590_v10, %s2516_s1 }
 0x655   :  { %1111 = vrot.lane.b32.xlu1 %v2601_v15, %s2516_s1 }
 0x6c5   :  { %v762_v23 = vpop.xlane.xlu1 %761 }
 0x6c6   :  { %v764_v24 = vsub.f32 %v2339_v19, %v762_v23 }
 0x6c7   :  { %v759_v25 = vpop.xlane.xlu0 %758 }
 0x6c8   :  { %v767_v26 = vmul.f32 1.442695, %v764_v24  ;;  %v763_v27 = vsub.f32 %v748_v21, %v759_v25 }
 0x6c9   :  { %v1076_v28 = vpop.permute.xlu1 %1075 }
 0x6ca   :  { %2444 = vpow2.f32 %v767_v26  ;;  %v765_v29 = vmul.f32 1.442695, %v763_v27  ;;  %1078 = vxpose.xlu0.b32.start.end [1/1] (short) (narrow) %v1076_v28, 16 }
 0x6cc   :  { %2446 = vpow2.f32 %v765_v29 }
 0x6cd   :  { %v1305_v15 = vpop.permute.xlu1 %1304 }
 0x6d1   :  { %v1112_v32 = vpop.permute.xlu1 %1111 }
 0x6d7   :  { %v2445_v30 = vpop.eup %2444 }
 0x6d8   :  { %v772_v31 = vsel %vm326_vm2, %v2445_v30, 0.0 }
 0x6d9   :  { %v2447_v11 = vpop.eup %2446  ;;  %773 = vadd.xlane.f32.xlu1 %v772_v31 }
 0x6da   :  { %v769_v10 = vsel %vm326_vm2, %v2447_v11, 0.0 }
 0x6dd   :  { %770 = vadd.xlane.f32.xlu1 %v769_v10 }
 0x6ee   :  { %1340 = vrot.lane.b32.xlu1 %v2599_v14, %s2516_s1  ;;  %v2699_v14 = vpop.f32.mrf.mxu0 }
 0x717   :  { %859 = vxpose.xlu1.b32.start.end [1/1] (short) (narrow) %v2595_v12, 16 }
 0x71c   :  { %1307 = vxpose.xlu1.b32.start.end [1/1] (short) (narrow) %v1305_v15, 16 }
 0x746   :  { %v1094_v47 = vpop.trf.xlu0 }
 0x74a   :  { %v1095_v49 = vpop.trf.xlu0 }
 0x762   :  { %v774_v33 = vpop.xlane.xlu1 %773 }
 0x763   :  { %2448 = vrcp.f32 %v774_v33 }
 0x766   :  { %v771_v34 = vpop.xlane.xlu1 %770 }
 0x767   :  { %2450 = vrcp.f32 %v771_v34 }
 0x76a   :  { %v1341_v44 = vpop.permute.xlu1 %1340 }
 0x770   :  { %v2449_v35 = vpop.eup %2448 }
 0x771   :  { %v778_v37 = vmul.f32 %v2449_v35, %v2445_v30 }
 0x773   :  { %2341 = vmatpush3.xpose.msk.msra.mxu1 %vm326_vm2, %v778_v37 }
 0x774   :  { %v2451_v41 = vpop.eup %2450  ;;  %2342 = vmatprep.subr.mxu1 %v2514_v36 }
 0x775   :  { %v776_v42 = vmul.f32 %v2451_v41, %v2447_v11 }
 0x777   :  { %2343 = vmatpush3.xpose.msk.msra.mxu1 %vm326_vm2, %v776_v42 }
 0x778   :  { %2347 = vmatprep.subr.mxu1 %v2632_v39 }
 0x77a   :  { %2345 = vmatmul.mubr.msk.f32.vlgmr.msra.gmra.mxu1 %vm326_vm2, %v2699_v14 }
 0x77b   :  { %2348 = vmatpush3.msra.mxu1 %v2632_v39 }
 0x77c   :  { %2359 = vmatprep.subr.mxu1 %v1112_v32 }
 0x793   :  { %v875_v45 = vpop.trf.xlu1 }
 0x794   :  { %2349 = vmatprep.mubr.msk.f32.mxu1 %vm244_vm1, %v875_v45 }
 0x797   :  { %v876_v48 = vpop.trf.xlu1 }
 0x798   :  { %2350 = vmatmul.mubr.msk.f32.vlgmr.msra.gmra.mxu1 %vm244_vm1, %v876_v48 }
 0x799   :  { %2360 = vmatpush3.msra.mxu1 %v1112_v32  ;;  %2361 = vmatprep.mubr.msk.f32.mxu1 %vm244_vm1, %v1094_v47 }
 0x79a   :  { %2371 = vmatprep.subr.mxu1 %v1341_v44 }
 0x79b   :  { %v1323_v50 = vpop.trf.xlu1 }
 0x79c   :  { %2362 = vmatmul.mubr.msk.f32.vlgmr.msra.gmra.mxu1 %vm244_vm1, %v1095_v49 }
 0x79d   :  { %2372 = vmatpush3.msra.mxu1 %v1341_v44  ;;  %2373 = vmatprep.mubr.msk.f32.mxu1 %vm244_vm1, %v1323_v50 }
 0x79e   :  { %2376 = vmatprep.subr.mxu1 %v2514_v36 }
 0x79f   :  { %v1324_v51 = vpop.trf.xlu1 }
 0x7a0   :  { %2374 = vmatmul.mubr.msk.f32.vlgmr.msra.gmra.mxu1 %vm244_vm1, %v1324_v51 }
 0x7a1   :  { %2380 = vmatprep.mubr.msk.f32.mxu1 %vm2515_vm3, %v2514_v36 }
 0x83a   :  { %v854_v52 = vpop.f32.mrf.mxu1 }
 0x83b   :  { %858 = vst.msk [vmem:[#allocation2 + $0x10] sm:$0xff] %vm326_vm2, %v854_v52 }
 0x83c   :  { %v2346_v53 = vpop.f32.mrf.mxu1 }
 0x858   :  { %v2715_v54 = vpop.f32.mrf.mxu1 }
 0x85a   :  { %v2717_v55 = vpop.f32.mrf.mxu1 }
 0x85b   :  { %v972_v8 = vsel %vm326_vm2, %v2717_v55, -inf }
 0x85c   :  { %v2719_v56 = vpop.f32.mrf.mxu1 }
 0x85d   :  { %v1198_v6 = vsel %vm326_vm2, %v2719_v56, -inf }
 0x85e   :  { %v2721_v57 = vpop.f32.mrf.mxu1 }
 0x85f   :  { %v1195_v9 = vsel %vm326_vm2, %v2721_v57, -inf }
 0x860   :  { %v2375_v58 = vpop.f32.mrf.mxu1 }
 0x861   :  { %v1427_v59 = vsel %vm326_vm2, %v2375_v58, -inf }
 0x862   :  { %1428 = vmax.xlane.f32.xlu1 %v1427_v59  ;;  %v1415_v60 = vpop.f32.mrf.mxu1 }
 0x863   :  { %v1424_v61 = vsel %vm326_vm2, %v1415_v60, -inf }
 0x864   :  { %1425 = vmax.xlane.f32.xlu0 %v1424_v61 }
 0x873   :  { %1532 = vrot.lane.b32.xlu1 %v2597_v13, %s2516_s1 }
 0x877   :  { %1446 = vrot.lane.b32.xlu1 %v2637_v43, %s2516_s1 }
 0x87a   :  { %1760 = vrot.lane.b32.xlu0 %v2595_v12, %s2516_s1 }
 0x87b   :  { %1568 = vrot.lane.b32.xlu1 %v2634_v40, %s2516_s1  ;;  %v975_v40 = vsel %vm326_vm2, %v2715_v54, -inf }
 0x8eb   :  { %v1429_v62 = vpop.xlane.xlu1 %1428 }
 0x8ec   :  { %v1431_v63 = vsub.f32 %v2375_v58, %v1429_v62 }
 0x8ed   :  { %v1426_v0 = vpop.xlane.xlu0 %1425 }
 0x8ee   :  { %v1434_v1 = vmul.f32 1.442695, %v1431_v63  ;;  %v1430_v2 = vsub.f32 %v1415_v60, %v1426_v0 }
 0x8ef   :  { %v1533_v7 = vpop.permute.xlu1 %1532 }
 0x8f0   :  { %2452 = vpow2.f32 %v1434_v1  ;;  %v1432_v3 = vmul.f32 1.442695, %v1430_v2 }
 0x8f1   :  { %v1761_v4 = vpop.permute.xlu0 %1760 }
 0x8f2   :  { %2454 = vpow2.f32 %v1432_v3  ;;  %1763 = vxpose.xlu0.b32.start.end [1/1] (short) (narrow) %v1761_v4, 16 }
 0x8f3   :  { %v1447_v16 = vpop.permute.xlu1 %1446 }
 0x8fd   :  { %v2453_v13 = vpop.eup %2452 }
 0x8fe   :  { %v1439_v5 = vsel %vm326_vm2, %v2453_v13, 0.0 }
 0x8ff   :  { %v2455_v43 = vpop.eup %2454  ;;  %1440 = vadd.xlane.f32.xlu1 %v1439_v5 }
 0x900   :  { %v1436_v12 = vsel %vm326_vm2, %v2455_v43, 0.0 }
 0x903   :  { %1437 = vadd.xlane.f32.xlu1 %v1436_v12 }
 0x914   :  { %1796 = vrot.lane.b32.xlu1 %v2632_v39, %s2516_s1  ;;  %v1569_v39 = vpop.permute.xlu1 %1568 }
 0x923   :  { %976 = vmax.xlane.f32.xlu0 %v975_v40 }
 0x927   :  { %1199 = vmax.xlane.f32.xlu0 %v1198_v6 }
 0x93d   :  { %1535 = vxpose.xlu1.b32.start.end [1/1] (short) (narrow) %v1533_v7, 16 }
 0x968   :  { %973 = vmax.xlane.f32.xlu1 %v972_v8 }
 0x96c   :  { %1196 = vmax.xlane.f32.xlu1 %v1195_v9 }
 0x96e   :  { %v1779_v25 = vpop.trf.xlu0 }
 0x972   :  { %v1780_v27 = vpop.trf.xlu0 }
 0x988   :  { %v1441_v17 = vpop.xlane.xlu1 %1440 }
 0x989   :  { %2456 = vrcp.f32 %v1441_v17 }
 0x98c   :  { %v1438_v18 = vpop.xlane.xlu1 %1437 }
 0x98d   :  { %2458 = vrcp.f32 %v1438_v18 }
 0x990   :  { %v1797_v23 = vpop.permute.xlu1 %1796 }
 0x996   :  { %v2457_v19 = vpop.eup %2456 }
 0x997   :  { %v1445_v20 = vmul.f32 %v2457_v19, %v2453_v13 }
 0x999   :  { %2377 = vmatpush3.xpose.msk.msra.mxu1 %vm326_vm2, %v1445_v20 }
 0x99a   :  { %v2459_v21 = vpop.eup %2458  ;;  %2378 = vmatprep.subr.mxu1 %v2514_v36 }
 0x99b   :  { %v1443_v22 = vmul.f32 %v2459_v21, %v2455_v43 }
 0x99d   :  { %2379 = vmatpush3.xpose.msk.msra.mxu1 %vm326_vm2, %v1443_v22 }
 0x99e   :  { %2383 = vmatprep.subr.mxu1 %v1569_v39 }
 0x9a0   :  { %2381 = vmatmul.mubr.msk.f32.vlgmr.msra.gmra.mxu1 %vm326_vm2, %v1447_v16 }
 0x9a1   :  { %2384 = vmatpush3.msra.mxu1 %v1569_v39 }
 0x9a2   :  { %2395 = vmatprep.subr.mxu1 %v1797_v23 }
 0x9ac   :  { %v977_v31 = vpop.xlane.xlu0 %976 }
 0x9ad   :  { %v979_v15 = vsub.f32 %v2715_v54, %v977_v31 }
 0x9af   :  { %v982_v35 = vmul.f32 1.442695, %v979_v15 }
 0x9b0   :  { %v1200_v34 = vpop.xlane.xlu0 %1199 }
 0x9b1   :  { %v1202_v37 = vsub.f32 %v2719_v56, %v1200_v34 }
 0x9b3   :  { %v1205_v42 = vmul.f32 1.442695, %v1202_v37 }
 0x9b9   :  { %v1551_v24 = vpop.trf.xlu1 }
 0x9ba   :  { %2385 = vmatprep.mubr.msk.f32.mxu1 %vm244_vm1, %v1551_v24 }
 0x9bd   :  { %v1552_v26 = vpop.trf.xlu1 }
 0x9be   :  { %2386 = vmatmul.mubr.msk.f32.vlgmr.msra.gmra.mxu1 %vm244_vm1, %v1552_v26 }
 0x9bf   :  { %2396 = vmatpush3.msra.mxu1 %v1797_v23  ;;  %2397 = vmatprep.mubr.msk.f32.mxu1 %vm244_vm1, %v1779_v25 }
 0x9c0   :  { %2400 = vmatprep.subr.mxu1 %v2514_v36 }
 0x9c2   :  { %2398 = vmatmul.mubr.msk.f32.vlgmr.msra.gmra.mxu1 %vm244_vm1, %v1780_v27 }
 0x9c3   :  { %2404 = vmatprep.mubr.msk.f32.mxu1 %vm2515_vm3, %v2514_v36 }
 0x9f1   :  { %v974_v30 = vpop.xlane.xlu1 %973 }
 0x9f2   :  { %v978_v11 = vsub.f32 %v2717_v55, %v974_v30 }
 0x9f4   :  { %v980_v32 = vmul.f32 1.442695, %v978_v11 }
 0x9f5   :  { %v1197_v10 = vpop.xlane.xlu1 %1196 }
 0x9f6   :  { %v1201_v33 = vsub.f32 %v2721_v57, %v1197_v10  ;;  %2460 = vpow2.f32 %v980_v32 }
 0x9f7   :  { %2462 = vpow2.f32 %v982_v35 }
 0x9f8   :  { %v1203_v41 = vmul.f32 1.442695, %v1201_v33 }
 0x9fa   :  { %2464 = vpow2.f32 %v1203_v41 }
 0x9fb   :  { %2466 = vpow2.f32 %v1205_v42 }
 0xa03   :  { %v2461_v51 = vpop.eup %2460 }
 0xa04   :  { %v2463_v53 = vpop.eup %2462  ;;  %v984_v55 = vsel %vm326_vm2, %v2461_v51, 0.0 }
 0xa05   :  { %v987_v57 = vsel %vm326_vm2, %v2463_v53, 0.0 }
 0xa07   :  { %v2465_v56 = vpop.eup %2464 }
 0xa08   :  { %v1207_v58 = vsel %vm326_vm2, %v2465_v56, 0.0  ;;  %v2467_v59 = vpop.eup %2466 }
 0xa09   :  { %v1210_v60 = vsel %vm326_vm2, %v2467_v59, 0.0 }
 0xa60   :  { %v2756_v28 = vpop.f32.mrf.mxu1 }
 0xa62   :  { %v2382_v29 = vpop.f32.mrf.mxu1 }
 0xa7e   :  { %v2387_v44 = vpop.f32.mrf.mxu1 }
 0xa7f   :  { %v1655_v45 = vsel %vm326_vm2, %v2387_v44, -inf }
 0xa80   :  { %v1643_v47 = vpop.f32.mrf.mxu1  ;;  %1656 = vmax.xlane.f32.xlu1 %v1655_v45 }
 0xa81   :  { %v1652_v50 = vsel %vm326_vm2, %v1643_v47, -inf }
 0xa82   :  { %v2399_v48 = vpop.f32.mrf.mxu1 }
 0xa83   :  { %v1883_v49 = vsel %vm326_vm2, %v2399_v48, -inf }
 0xa84   :  { %1884 = vmax.xlane.f32.xlu0 %v1883_v49  ;;  %v1871_v52 = vpop.f32.mrf.mxu1  ;;  %1653 = vmax.xlane.f32.xlu1 %v1652_v50 }
 0xa85   :  { %v1880_v54 = vsel %vm326_vm2, %v1871_v52, -inf }
 0xa88   :  { %1881 = vmax.xlane.f32.xlu0 %v1880_v54  ;;  %985 = vadd.xlane.f32.xlu1 %v984_v55 }
 0xa8c   :  { %988 = vadd.xlane.f32.xlu0 %v987_v57  ;;  %1208 = vadd.xlane.f32.xlu1 %v1207_v58 }
 0xa90   :  { %1211 = vadd.xlane.f32.xlu0 %v1210_v60 }
 0xb09   :  { %v1657_v61 = vpop.xlane.xlu1 %1656 }
 0xb0a   :  { %v1659_v62 = vsub.f32 %v2387_v44, %v1657_v61 }
 0xb0c   :  { %v1662_v63 = vmul.f32 1.442695, %v1659_v62  ;;  %v36_v62 = vld [vmem:[%s2833_s2 + $0x10] sm:$0xff] }
 0xb0d   :  { %v1885_v0 = vpop.xlane.xlu0 %1884  ;;  %v1654_v1 = vpop.xlane.xlu1 %1653 }
 0xb0e   :  { %2468 = vpow2.f32 %v1662_v63  ;;  %v1887_v2 = vsub.f32 %v2399_v48, %v1885_v0  ;;  %v1658_v3 = vsub.f32 %v1643_v47, %v1654_v1  ;;  %v37_v63 = vld [vmem:[%s2833_s2 + $0x18] sm:$0xff] }
 0xb10   :  { %v1890_v4 = vmul.f32 1.442695, %v1887_v2  ;;  %v1660_v13 = vmul.f32 1.442695, %v1658_v3 }
 0xb11   :  { %v1882_v5 = vpop.xlane.xlu0 %1881  ;;  %v986_v6 = vpop.xlane.xlu1 %985 }
 0xb12   :  { %2470 = vpow2.f32 %v1890_v4  ;;  %v1886_v43 = vsub.f32 %v1871_v52, %v1882_v5  ;;  %v2212_v4 = vld [vmem:[%s2834_s3] ss:$0 sm:$0xff] }
 0xb13   :  { %2472 = vpow2.f32 %v1660_v13 }
 0xb14   :  { %v1888_v12 = vmul.f32 1.442695, %v1886_v43 }
 0xb15   :  { %v989_v40 = vpop.xlane.xlu0 %988  ;;  %v1209_v16 = vpop.xlane.xlu1 %1208 }
 0xb16   :  { %2474 = vpow2.f32 %v1888_v12 }
 0xb17   :  { %2476 = vrcp.f32 %v989_v40 }
 0xb18   :  { %2478 = vrcp.f32 %v986_v6 }
 0xb19   :  { %v1212_v7 = vpop.xlane.xlu0 %1211 }
 0xb1a   :  { %2480 = vrcp.f32 %v1212_v7 }
 0xb1b   :  { %v2469_v8 = vpop.eup %2468  ;;  %2482 = vrcp.f32 %v1209_v16 }
 0xb1c   :  { %v1667_v9 = vsel %vm326_vm2, %v2469_v8, 0.0 }
 0xb1d   :  { %1668 = vadd.xlane.f32.xlu1 %v1667_v9 }
 0xb1f   :  { %v2471_v39 = vpop.eup %2470 }
 0xb20   :  { %v2473_v17 = vpop.eup %2472  ;;  %v1895_v18 = vsel %vm326_vm2, %v2471_v39, 0.0 }
 0xb21   :  { %1896 = vadd.xlane.f32.xlu0 %v1895_v18  ;;  %v1664_v19 = vsel %vm326_vm2, %v2473_v17, 0.0 }
 0xb22   :  { %1665 = vadd.xlane.f32.xlu1 %v1664_v19 }
 0xb23   :  { %v2475_v20 = vpop.eup %2474 }
 0xb24   :  { %v2477_v21 = vpop.eup %2476  ;;  %v1892_v22 = vsel %vm326_vm2, %v2475_v20, 0.0 }
 0xb25   :  { %1893 = vadd.xlane.f32.xlu0 %v1892_v22  ;;  %v993_v23 = vmul.f32 %v2477_v21, %v2463_v53  ;;  %v2479_v24 = vpop.eup %2478  ;;  %v34_v53 = vld [vmem:[%s2833_s2] sm:$0xff] }
 0xb26   :  { %v991_v25 = vmul.f32 %v2479_v24, %v2461_v51 }
 0xb27   :  { %2353 = vmatpush3.xpose.msk.msra.mxu0 %vm326_vm2, %v993_v23  ;;  %v2481_v26 = vpop.eup %2480 }
 0xb28   :  { %2354 = vmatprep.subr.mxu0 %v2514_v36  ;;  %v1216_v27 = vmul.f32 %v2481_v26, %v2467_v59  ;;  %v2483_v29 = vpop.eup %2482 }
 0xb29   :  { %v1214_v30 = vmul.f32 %v2483_v29, %v2465_v56 }
 0xb2b   :  { %2355 = vmatpush3.xpose.msk.msra.mxu0 %vm326_vm2, %v991_v25 }
 0xb2c   :  { %2364 = vmatprep.subr.mxu0 %v2514_v36 }
 0xb2e   :  { %2357 = vmatmul.mubr.msk.f32.vlgmr.msra.gmra.mxu0 %vm326_vm2, %v2695_v38 }
 0xb2f   :  { %2365 = vmatpush3.xpose.msk.msra.mxu0 %vm326_vm2, %v1216_v27  ;;  %2368 = vmatprep.mubr.msk.f32.mxu0 %vm2515_vm3, %v2514_v36 }
 0xb30   :  { %2366 = vmatprep.subr.mxu0 %v2514_v36 }
 0xb33   :  { %1902 = vrot.lane.b32.xlu1 %v2695_v38, %s2516_s1  ;;  %2367 = vmatpush3.xpose.msk.msra.mxu0 %vm326_vm2, %v1214_v30 }
 0xb34   :  { %2388 = vmatprep.subr.mxu0 %v2514_v36 }
 0xb37   :  { %1674 = vrot.lane.b32.xlu1 %v2699_v14, %s2516_s1 }
 0xb3b   :  { %1217 = vrot.lane.b32.xlu0 %v2641_v46, %s2516_s1 }
 0xba6   :  { %v1669_v31 = vpop.xlane.xlu1 %1668 }
 0xba7   :  { %2484 = vrcp.f32 %v1669_v31 }
 0xbaa   :  { %v1897_v11 = vpop.xlane.xlu0 %1896 }
 0xbab   :  { %2486 = vrcp.f32 %v1897_v11  ;;  %v1666_v10 = vpop.xlane.xlu1 %1665 }
 0xbac   :  { %2488 = vrcp.f32 %v1666_v10 }
 0xbae   :  { %v1894_v15 = vpop.xlane.xlu0 %1893 }
 0xbaf   :  { %2490 = vrcp.f32 %v1894_v15  ;;  %v1903_v46 = vpop.permute.xlu1 %1902 }
 0xbb2   :  { %v1218_v32 = vpop.permute.xlu0 %1217 }
 0xbb3   :  { %2369 = vmatmul.mubr.msk.f32.vlgmr.msra.gmra.mxu0 %vm326_vm2, %v1218_v32  ;;  %v1675_v44 = vpop.permute.xlu1 %1674 }
 0xbb4   :  { %v2485_v38 = vpop.eup %2484  ;;  %2392 = vmatprep.mubr.msk.f32.mxu0 %vm2515_vm3, %v2514_v36 }
 0xbb5   :  { %v1673_v33 = vmul.f32 %v2485_v38, %v2469_v8 }
 0xbb7   :  { %2389 = vmatpush3.xpose.msk.msra.mxu0 %vm326_vm2, %v1673_v33 }
 0xbb8   :  { %v2487_v14 = vpop.eup %2486  ;;  %2390 = vmatprep.subr.mxu0 %v2514_v36 }
 0xbb9   :  { %v2489_v34 = vpop.eup %2488  ;;  %v1901_v35 = vmul.f32 %v2487_v14, %v2471_v39 }
 0xbba   :  { %v1671_v37 = vmul.f32 %v2489_v34, %v2473_v17 }
 0xbbb   :  { %2401 = vmatpush3.xpose.msk.msra.mxu1 %vm326_vm2, %v1901_v35 }
 0xbbc   :  { %v2491_v41 = vpop.eup %2490  ;;  %2391 = vmatpush3.xpose.msk.msra.mxu0 %vm326_vm2, %v1671_v37  ;;  %2402 = vmatprep.subr.mxu1 %v2514_v36 }
 0xbbd   :  { %v1899_v42 = vmul.f32 %v2491_v41, %v2475_v20 }
 0xbbf   :  { %2393 = vmatmul.mubr.msk.f32.vlgmr.msra.gmra.mxu0 %vm326_vm2, %v1675_v44  ;;  %2403 = vmatpush3.xpose.msk.msra.mxu1 %vm326_vm2, %v1899_v42 }
 0xbc0   :  { %2415 = vmatprep.mubr.msk.f32.mxu0 %vm1991_vm4, %v34_v53 }
 0xbc2   :  { %2405 = vmatmul.mubr.msk.f32.vlgmr.msra.gmra.mxu1 %vm326_vm2, %v1903_v46 }
 0xbee   :  { %v1069_v45 = vpop.f32.mrf.mxu0 }
 0xbef   :  { %1073 = vst.msk [vmem:[#allocation2 + $0x18] sm:$0xff] %vm326_vm2, %v1069_v45 }
 0xbf0   :  { %v2358_v47 = vpop.f32.mrf.mxu0 }
 0xc73   :  { %v1293_v48 = vpop.f32.mrf.mxu0 }
 0xc75   :  { %v2370_v49 = vpop.f32.mrf.mxu0 }
 0xc7f   :  { %v1750_v50 = vpop.f32.mrf.mxu0 }
 0xc80   :  { %1755 = vrot.lane.b32.xlu1 %v1750_v50, %s2517_s20 }
 0xc81   :  { %v2394_v51 = vpop.f32.mrf.mxu0 }
 0xc82   :  { %v1978_v52 = vpop.f32.mrf.mxu1 }
 0xc83   :  { %1983 = vrot.lane.b32.xlu0 %v1978_v52, %s2517_s20 }
 0xc84   :  { %1298 = vrot.lane.b32.xlu1 %v1293_v48, %s2517_s20  ;;  %v2406_v36 = vpop.f32.mrf.mxu1 }
 0xc87   :  { %1527 = vrot.lane.b32.xlu0 %v2756_v28, %s2517_s20  ;;  %v35_v28 = vld [vmem:[%s2833_s2 + $0x8] sm:$0xff]  ;;  %s2518_s2 = smov [#allocation3]  }
 0xc88   :  { %s2141_s30 = sshll.u32 %s2518_s2, 4  ;;  %s2142_s30 = int_to_ptr.vmem [resolvable:$true] %s2141_s30 }
 0xc89   :  { %s2492_s3 = scalar_lea.vmem %s2142_s30, 512  ;;  %p2497_p1 = scmp.lt.s32.totalorder %s2142_s30, %s2142_s30 }
 0xc8a   :  { %p2493_p0 = scmp.ne.s32.totalorder %s2142_s30, %s2492_s3  ;;  %p2498_p2 = scmp.lt.s32.totalorder %s2492_s3, %s2492_s3 }
 0xc8c   :  { %p2499_p3 = por %p2498_p2, %p2497_p1 }
 0xc8e   :  { %p2500_p4 = pnand %p2499_p3, %p2493_p0 }
 0xcf2   :  { %v1756_v54 = vpop.permute.xlu1 %1755 }
 0xcf3   :  { %1758 = vst.msk [vmem:[#allocation2 + $0x10] sm:$0xff] %vm1301_vm5, %v1756_v54 }
 0xcf5   :  { %v1984_v55 = vpop.permute.xlu0 %1983 }
 0xcf6   :  { %1986 = vst.msk [vmem:[#allocation2 + $0x18] sm:$0xff] %vm1301_vm5, %v1984_v55  ;;  %v1299_v56 = vpop.permute.xlu1 %1298 }
 0xcf7   :  { %1302 = vst.msk [vmem:[#allocation2] sm:$0xff] %vm1301_vm5, %v1299_v56 }
 0xcf9   :  { %v1528_v57 = vpop.permute.xlu0 %1527 }
 0xcfa   :  { %1530 = vst.msk [vmem:[#allocation2 + $0x8] sm:$0xff] %vm1301_vm5, %v1528_v57  ;;  %v1989_v59 = vld [vmem:[#allocation2 + $0x10] sm:$0xff] }
 0xcfd   :  { %v1990_v58 = vld [vmem:[#allocation2 + $0x18] sm:$0xff] }
 0xcfe   :  { %2407 = vmatprep.subr.mxu0 %v1990_v58  ;;  %v1987_v61 = vld [vmem:[#allocation2] sm:$0xff] }
 0xcff   :  { %2408 = vmatpush3.msra.mxu0 %v1990_v58 }
 0xd00   :  { %2409 = vmatprep.subr.mxu0 %v1989_v59 }
 0xd01   :  { %2410 = vmatpush3.msra.mxu0 %v1989_v59  ;;  %v1988_v60 = vld [vmem:[#allocation2 + $0x8] sm:$0xff] }
 0xd02   :  { %2411 = vmatprep.subr.mxu0 %v1988_v60 }
 0xd03   :  { %2412 = vmatpush3.msra.mxu0 %v1988_v60 }
 0xd04   :  { %2413 = vmatprep.subr.mxu0 %v1987_v61 }
 0xd05   :  { %2414 = vmatpush3.msra.mxu0 %v1987_v61 }
 0xd06   :  { %2416 = vmatmul.mubr.msk.f32.vlgmr.msra.gmra.mxu0 %vm1991_vm4, %v35_v28 }
 0xd07   :  { %2418 = vmatprep.mubr.msk.f32.mxu0 %vm1991_vm4, %v36_v62 }
 0xd0a   :  { %2419 = vmatmul.mubr.msk.f32.gmra.mxu0 %vm1991_vm4, %v37_v63 }
 0xdc6   :  { %v2417_v0 = vpop.f32.mrf.mxu0 }
 0xdc8   :  { %v2070_v1 = vpop.f32.mrf.mxu0 }
 0xdc9   :  { %2089 = vxpose.xlu0.b32.start [1/4] (short) (narrow) %v2070_v1, 32 }
 0xdca   :  { %v2420_v2 = vpop.f32.mrf.mxu0 }
 0xdcc   :  { %v2080_v3 = vpop.f32.mrf.mxu0 }
 0xdcd   :  { %2090 = vxpose.xlu0.b32.cont [2/4] (short) (narrow) %v2417_v0, 32 }
 0xdd1   :  { %2091 = vxpose.xlu0.b32.cont [3/4] (short) (narrow) %v2080_v3, 32 }
 0xdd5   :  { %2092 = vxpose.xlu0.b32.end [4/4] (short) (narrow) %v2420_v2, 32 }
 0xe45   :  { %v2105_v13 = vpop.trf.xlu0 }
 0xe46   :  { %v2128_v5 = vadd.f32 %v2212_v4, %v2105_v13 }
 0xe48   :  { %2132 = vst.msk [vmem:[#allocation3] sm:$0xff] %vm1991_vm4, %v2128_v5 }
 0xe49   :  { %v2106_v43 = vpop.trf.xlu0 }
 0xe4a   :  { %v2129_v12 = vadd.f32 %v2212_v4, %v2106_v43 }
 0xe4c   :  { %2133 = vst.msk [vmem:[#allocation3 + $0x8] sm:$0xff] %vm1991_vm4, %v2129_v12 }
 0xe4d   :  { %v2107_v40 = vpop.trf.xlu0 }
 0xe4e   :  { %v2130_v6 = vadd.f32 %v2212_v4, %v2107_v40 }
 0xe50   :  { %2134 = vst.msk [vmem:[#allocation3 + $0x10] sm:$0xff] %vm1991_vm4, %v2130_v6 }
 0xe51   :  { %v2108_v7 = vpop.trf.xlu0 }
 0xe52   :  { %v2131_v8 = vadd.f32 %v2212_v4, %v2108_v7 }
 0xe54   :  { %2135 = vst.msk [vmem:[#allocation3 + $0x18] sm:$0xff] %vm1991_vm4, %v2131_v8 }
 0xe55   :  { %2503 = shalt.err (!%p2500_p4)
}
 0xe56   :  { %s2519_s5 = smov 128   ;;  %s2520_s6 = smov 8  }
 0xe57   :  { %2147 = dma.vmem_to_hbm [thread:$0]  %s2142_s30, 512, %s2835_s4, [#allocation4], %s2519_s5, %s2519_s5, %s2520_s6  }
 0xe58   :  { %2512 = dma.done.wait [#allocation4], 512  }
 0xe59   :  { %2513 = vsyncadd [#allocation4], 4294966784 }
 0xe5a   :  { %2151 = vsyncpa [#allocation4], 1 }

</bundles_post_ra>
